<compile_context>
chip_gen: v7x
topology: tpu7x:2x2x1
jax: 0.10.0
libtpu: 0.0.40
codegen_flags: <defaults>
</compile_context>

<pallas_src>
import functools

import jax
import jax.numpy as jnp
from jax.experimental import pallas as pl
from jax.experimental.pallas import tpu as pltpu


def dnn3_kernel(x_ref,
                wi_ref, bi_ref,    # packed input  Linear: (2, Hp), (1, Hp)   [f32]
                wh_ref,            # packed hidden Linear: (Hp, Hp)           [matmul dtype]
                wout_ref,          # packed output Linear: (Hp, OUT_PAD)      [matmul dtype]
                z_ref,             # output tile:          (bm, OUT_PAD)      [f32]
                *, n_hidden_layers, h_width):
    mm_dtype = wh_ref.dtype
    x = x_ref[...]                       # (bm, 2)
    wi = wi_ref[...]                     # (2, Hp)
    bi = bi_ref[...]                     # (1, Hp)

    # Input layer: K=2 matmul is pure MXU fill/drain -> two VPU multiply-adds.
    # Lane layout after this: [0:H) relu pre-act, [H:2H) tanh pre-act (same values,
    # shared input weights), lane 2H = 1.0 (bias carrier), lanes > 2H = 0.
    a = x[:, 0:1] * wi[0:1, :] + x[:, 1:2] * wi[1:2, :] + bi        # (bm, Hp)

    def nonlin(a):
        # tanh only on the tanh block; relu everywhere else preserves the carrier
        # (relu(1)=1) and the zero padding (relu(0)=0).  Mask is recomputed per
        # layer (cheap VPU iota) to avoid a large live range across the unrolled
        # loop.
        col = jax.lax.broadcasted_iota(jnp.int32, a.shape, 1)
        is_tanh = (col >= h_width) & (col < 2 * h_width)
        return jnp.where(is_tanh, jnp.tanh(a), jnp.maximum(a, 0.0))

    h = nonlin(a)                         # (bm, Hp) f32

    # Hidden layers: block-diagonal weight (relu block, tanh block) + bias row at the
    # carrier lane + carrier identity -> one MXU matmul per layer, no bias add,
    # no branch select beyond the lane-mask nonlinearity.
    wh = wh_ref[...]                      # (Hp, Hp)
    for _ in range(n_hidden_layers):
        a = jnp.dot(h.astype(mm_dtype), wh, preferred_element_type=jnp.float32)
        h = nonlin(a)

    # Output layer: wout rows [0:H) hold wo (cols < out-1), rows [H:2H) hold wo2
    # (last real col), row 2H holds [bo | bo2].  The matmul directly yields the
    # final tile; padded columns are exactly zero.
    z = jnp.dot(h.astype(mm_dtype), wout_ref[...],
                preferred_element_type=jnp.float32)                # (bm, OUT_PAD)
    z_ref[...] = z.astype(z_ref.dtype)                             # lane-dense store


def dnn3_forward(x, params, *, n_hidden_layers=8, block_m=1024,
                 matmul_dtype=jnp.float32):
    """x: (B, 2) float32.  params: dict of pre-transposed weights/biases.

    matmul_dtype=jnp.bfloat16 puts the MXU operands in bf16 (f32 accumulate):
    2-4x MXU throughput on v6e/v7x, at ~1e-3 relative error over 8 chained layers.
    """
    LANE, SUB = 128, 8
    B = x.shape[0]
    H = params["wi"].shape[1]
    out_dim = params["wo"].shape[1] + 1

    # Lane-packed layout: lanes [0:H) relu branch, [H:2H) tanh branch,
    # lane C = 2H bias carrier, rest zero-padding.
    C = 2 * H
    Hp = ((2 * H + 1 + LANE - 1) // LANE) * LANE
    OUT_PAD = ((out_dim + LANE - 1) // LANE) * LANE

    wi = jnp.zeros((2, Hp), jnp.float32)
    wi = wi.at[:, :H].set(params["wi"]).at[:, H:2 * H].set(params["wi"])
    bi = jnp.zeros((1, Hp), jnp.float32)
    bi = bi.at[:, :H].set(params["bi"]).at[:, H:2 * H].set(params["bi"])
    bi = bi.at[:, C].set(1.0)                                  # carrier = 1

    wh = jnp.zeros((Hp, Hp), jnp.float32)
    wh = wh.at[:H, :H].set(params["wh"]).at[H:2 * H, H:2 * H].set(params["wh"])
    wh = wh.at[C, :H].set(params["bh"][0]).at[C, H:2 * H].set(params["bh"][0])
    wh = wh.at[C, C].set(1.0)                                  # keep carrier alive

    wout = jnp.zeros((Hp, OUT_PAD), jnp.float32)
    wout = wout.at[:H, :out_dim - 1].set(params["wo"])
    wout = wout.at[H:2 * H, out_dim - 1:out_dim].set(params["wo2"])
    wout = wout.at[C, :out_dim - 1].set(params["bo"][0])
    wout = wout.at[C, out_dim - 1].set(params["bo2"][0, 0])

    # Pre-cast MXU operands once in the wrapper (halves their VMEM footprint too).
    wh = wh.astype(matmul_dtype)
    wout = wout.astype(matmul_dtype)

    # Batch tiling: big tiles (per-grid-step overhead ~0.35us), multiple of 8 rows,
    # and an even step count when multi-step so v7x's 2 TensorCores stay balanced.
    B8 = -(-B // SUB) * SUB
    if B8 <= block_m:
        steps, bm = 1, B8
    else:
        steps = -(-B8 // block_m)
        if steps % 2:
            steps += 1
        bm = -(-(-(-B8 // steps)) // SUB) * SUB
    Bp = steps * bm
    xp = jnp.pad(x, ((0, Bp - B), (0, 0))) if Bp != B else x

    kernel = functools.partial(dnn3_kernel,
                               n_hidden_layers=n_hidden_layers,
                               h_width=H)

    def const_spec(a):
        # Constant index_map -> Mosaic block-revisit detection skips re-fetching
        # these tiny weight tiles between grid steps.
        return pl.BlockSpec(a.shape, lambda i: (0, 0))

    weights = (wi, bi, wh, wout)
    in_specs = [pl.BlockSpec((bm, 2), lambda i: (i, 0))] + [const_spec(a) for a in weights]
    out_specs = pl.BlockSpec((bm, OUT_PAD), lambda i: (i, 0))

    zp = pl.pallas_call(
        kernel,
        grid=(steps,),
        in_specs=in_specs,
        out_specs=out_specs,
        out_shape=jax.ShapeDtypeStruct((Bp, OUT_PAD), jnp.float32),
        compiler_params=pltpu.CompilerParams(dimension_semantics=("parallel",)),
    )(xp, *weights)

    return zp[:B, :out_dim]


def init_params(key, num_neurons, output):
    """Deterministic init mimicking nn.Linear's U(-1/sqrt(fan_in), 1/sqrt(fan_in)).

    Weights are stored transposed: (in_features, out_features)."""
    def linear(key, fan_in, fan_out):
        kw, kb = jax.random.split(key)
        bound = 1.0 / jnp.sqrt(fan_in)
        w = jax.random.uniform(kw, (fan_in, fan_out), jnp.float32, -bound, bound)
        b = jax.random.uniform(kb, (1, fan_out), jnp.float32, -bound, bound)
        return w, b

    k1, k2, k3, k4 = jax.random.split(key, 4)
    wi, bi = linear(k1, 2, num_neurons)
    wh, bh = linear(k2, num_neurons, num_neurons)
    wo, bo = linear(k3, num_neurons, output - 1)
    wo2, bo2 = linear(k4, num_neurons, 1)
    return dict(wi=wi, bi=bi, wh=wh, bh=bh, wo=wo, bo=bo, wo2=wo2, bo2=bo2)


def dnn3_reference(x, p, n_hidden_layers=8):
    x1 = x @ p["wi"] + p["bi"]
    h1 = jnp.maximum(x1, 0.0)
    h2 = jnp.tanh(x1)
    for _ in range(n_hidden_layers):
        h1 = jnp.maximum(h1 @ p["wh"] + p["bh"], 0.0)
        h2 = jnp.tanh(h2 @ p["wh"] + p["bh"])
    z1 = h1 @ p["wo"] + p["bo"]
    z2 = h2 @ p["wo2"] + p["bo2"]
    return jnp.concatenate([z1, z2], axis=1)


if __name__ == "__main__":
    key = jax.random.PRNGKey(0)
    k_params, k_x = jax.random.split(key)

    num_neurons = 32
    output_dim = 4
    batch = 8

    params = init_params(k_params, num_neurons, output_dim)
    x = jax.random.normal(k_x, (batch, 2), jnp.float32)
    z_ref = dnn3_reference(x, params)

    # Exact-math f32 path.
    z = jax.block_until_ready(dnn3_forward(x, params))
    assert z.shape == (batch, output_dim), z.shape
    assert jnp.allclose(z, z_ref, atol=1e-4, rtol=1e-4), (
        float(jnp.max(jnp.abs(z - z_ref))))

    # bf16 MXU-operand path (recommended on v6e/v7x); relaxed tolerance.
    z_bf16 = jax.block_until_ready(
        dnn3_forward(x, params, matmul_dtype=jnp.bfloat16))
    assert jnp.allclose(z_bf16, z_ref, atol=5e-2, rtol=5e-2), (
        float(jnp.max(jnp.abs(z_bf16 - z_ref))))

    # Multi-tile path: non-multiple-of-8 batch, small block_m to force an (even) grid.
    x_big = jax.random.normal(k_x, (100, 2), jnp.float32)
    z_big = jax.block_until_ready(dnn3_forward(x_big, params, block_m=16))
    z_big_ref = dnn3_reference(x_big, params)
    assert z_big.shape == (100, output_dim), z_big.shape
    assert jnp.allclose(z_big, z_big_ref, atol=1e-4, rtol=1e-4), (
        float(jnp.max(jnp.abs(z_big - z_big_ref))))

    print("KERNEL_OK")
</pallas_src>

<mosaic_0001>
module attributes {stable_mosaic.version = 11 : i64} {
  func.func @dnn3_kernel(%arg0: i32, %arg1: memref<8x2xf32, #tpu.memory_space<vmem>>, %arg2: memref<2x128xf32, #tpu.memory_space<vmem>>, %arg3: memref<1x128xf32, #tpu.memory_space<vmem>>, %arg4: memref<128x128xf32, #tpu.memory_space<vmem>>, %arg5: memref<128x128xf32, #tpu.memory_space<vmem>>, %arg6: memref<8x128xf32, #tpu.memory_space<vmem>>) attributes {dimension_semantics = [#tpu.dimension_semantics<parallel>], iteration_bounds = array<i64: 1>, scalar_prefetch = 0 : i64, scratch_operands = 0 : i64, tpu.core_type = #tpu.core_type<tc>, window_params = [{transform_indices = @transform_0, window_bounds = array<i64: 8, 2>}, {pipeline_mode = #tpu.pipeline_mode<synchronous>, transform_indices = @transform_1, window_bounds = array<i64: 2, 128>}, {pipeline_mode = #tpu.pipeline_mode<synchronous>, transform_indices = @transform_2, window_bounds = array<i64: 1, 128>}, {pipeline_mode = #tpu.pipeline_mode<synchronous>, transform_indices = @transform_3, window_bounds = array<i64: 128, 128>}, {pipeline_mode = #tpu.pipeline_mode<synchronous>, transform_indices = @transform_4, window_bounds = array<i64: 128, 128>}, {transform_indices = @transform_5, window_bounds = array<i64: 8, 128>}]} {
    %c0 = arith.constant 0 : index
    %c0_0 = arith.constant 0 : index
    %0 = vector.load %arg1[%c0, %c0_0] : memref<8x2xf32, #tpu.memory_space<vmem>>, vector<8x2xf32>
    %c0_1 = arith.constant 0 : index
    %c0_2 = arith.constant 0 : index
    %1 = vector.load %arg2[%c0_1, %c0_2] : memref<2x128xf32, #tpu.memory_space<vmem>>, vector<2x128xf32>
    %c0_3 = arith.constant 0 : index
    %c0_4 = arith.constant 0 : index
    %2 = vector.load %arg3[%c0_3, %c0_4] : memref<1x128xf32, #tpu.memory_space<vmem>>, vector<1x128xf32>
    %3 = vector.extract_strided_slice %0 {offsets = [0, 0], sizes = [8, 1], strides = [1, 1]} : vector<8x2xf32> to vector<8x1xf32>
    %4 = vector.extract_strided_slice %1 {offsets = [0, 0], sizes = [1, 128], strides = [1, 1]} : vector<2x128xf32> to vector<1x128xf32>
    %5 = vector.broadcast %3 : vector<8x1xf32> to vector<8x128xf32>
    %6 = vector.broadcast %4 : vector<1x128xf32> to vector<8x128xf32>
    %7 = arith.mulf %5, %6 : vector<8x128xf32>
    %8 = vector.extract_strided_slice %0 {offsets = [0, 1], sizes = [8, 1], strides = [1, 1]} : vector<8x2xf32> to vector<8x1xf32>
    %9 = vector.extract_strided_slice %1 {offsets = [1, 0], sizes = [1, 128], strides = [1, 1]} : vector<2x128xf32> to vector<1x128xf32>
    %10 = vector.broadcast %8 : vector<8x1xf32> to vector<8x128xf32>
    %11 = vector.broadcast %9 : vector<1x128xf32> to vector<8x128xf32>
    %12 = arith.mulf %10, %11 : vector<8x128xf32>
    %13 = arith.addf %7, %12 : vector<8x128xf32>
    %14 = vector.broadcast %2 : vector<1x128xf32> to vector<8x128xf32>
    %15 = arith.addf %13, %14 : vector<8x128xf32>
    %16 = tpu.iota {dimensions = array<i32: 1>} : vector<8x128xi32>
    %c32_i32 = arith.constant 32 : i32
    %17 = vector.broadcast %c32_i32 : i32 to vector<8x128xi32>
    %18 = arith.cmpi sge, %16, %17 : vector<8x128xi32>
    %c64_i32 = arith.constant 64 : i32
    %19 = vector.broadcast %c64_i32 : i32 to vector<8x128xi32>
    %20 = arith.cmpi slt, %16, %19 : vector<8x128xi32>
    %21 = arith.andi %18, %20 : vector<8x128xi1>
    %22 = math.tanh %15 : vector<8x128xf32>
    %cst = arith.constant 0.000000e+00 : f32
    %23 = vector.broadcast %cst : f32 to vector<8x128xf32>
    %24 = arith.maximumf %15, %23 : vector<8x128xf32>
    %25 = arith.select %21, %22, %24 : vector<8x128xi1>, vector<8x128xf32>
    %c0_5 = arith.constant 0 : index
    %c0_6 = arith.constant 0 : index
    %26 = vector.load %arg4[%c0_5, %c0_6] : memref<128x128xf32, #tpu.memory_space<vmem>>, vector<128x128xf32>
    %cst_7 = arith.constant dense<0.000000e+00> : vector<8x128xf32>
    %27 = tpu.matmul %25, %26, %cst_7 {dimension_numbers = #tpu.dot_dimension_numbers<[1], [0], [0], [1], [0, 0, 1, 1], [], []>} : vector<8x128xf32>, vector<128x128xf32>, vector<8x128xf32> -> vector<8x128xf32>
    %28 = tpu.iota {dimensions = array<i32: 1>} : vector<8x128xi32>
    %c32_i32_8 = arith.constant 32 : i32
    %29 = vector.broadcast %c32_i32_8 : i32 to vector<8x128xi32>
    %30 = arith.cmpi sge, %28, %29 : vector<8x128xi32>
    %c64_i32_9 = arith.constant 64 : i32
    %31 = vector.broadcast %c64_i32_9 : i32 to vector<8x128xi32>
    %32 = arith.cmpi slt, %28, %31 : vector<8x128xi32>
    %33 = arith.andi %30, %32 : vector<8x128xi1>
    %34 = math.tanh %27 : vector<8x128xf32>
    %cst_10 = arith.constant 0.000000e+00 : f32
    %35 = vector.broadcast %cst_10 : f32 to vector<8x128xf32>
    %36 = arith.maximumf %27, %35 : vector<8x128xf32>
    %37 = arith.select %33, %34, %36 : vector<8x128xi1>, vector<8x128xf32>
    %cst_11 = arith.constant dense<0.000000e+00> : vector<8x128xf32>
    %38 = tpu.matmul %37, %26, %cst_11 {dimension_numbers = #tpu.dot_dimension_numbers<[1], [0], [0], [1], [0, 0, 1, 1], [], []>} : vector<8x128xf32>, vector<128x128xf32>, vector<8x128xf32> -> vector<8x128xf32>
    %39 = tpu.iota {dimensions = array<i32: 1>} : vector<8x128xi32>
    %c32_i32_12 = arith.constant 32 : i32
    %40 = vector.broadcast %c32_i32_12 : i32 to vector<8x128xi32>
    %41 = arith.cmpi sge, %39, %40 : vector<8x128xi32>
    %c64_i32_13 = arith.constant 64 : i32
    %42 = vector.broadcast %c64_i32_13 : i32 to vector<8x128xi32>
    %43 = arith.cmpi slt, %39, %42 : vector<8x128xi32>
    %44 = arith.andi %41, %43 : vector<8x128xi1>
    %45 = math.tanh %38 : vector<8x128xf32>
    %cst_14 = arith.constant 0.000000e+00 : f32
    %46 = vector.broadcast %cst_14 : f32 to vector<8x128xf32>
    %47 = arith.maximumf %38, %46 : vector<8x128xf32>
    %48 = arith.select %44, %45, %47 : vector<8x128xi1>, vector<8x128xf32>
    %cst_15 = arith.constant dense<0.000000e+00> : vector<8x128xf32>
    %49 = tpu.matmul %48, %26, %cst_15 {dimension_numbers = #tpu.dot_dimension_numbers<[1], [0], [0], [1], [0, 0, 1, 1], [], []>} : vector<8x128xf32>, vector<128x128xf32>, vector<8x128xf32> -> vector<8x128xf32>
    %50 = tpu.iota {dimensions = array<i32: 1>} : vector<8x128xi32>
    %c32_i32_16 = arith.constant 32 : i32
    %51 = vector.broadcast %c32_i32_16 : i32 to vector<8x128xi32>
    %52 = arith.cmpi sge, %50, %51 : vector<8x128xi32>
    %c64_i32_17 = arith.constant 64 : i32
    %53 = vector.broadcast %c64_i32_17 : i32 to vector<8x128xi32>
    %54 = arith.cmpi slt, %50, %53 : vector<8x128xi32>
    %55 = arith.andi %52, %54 : vector<8x128xi1>
    %56 = math.tanh %49 : vector<8x128xf32>
    %cst_18 = arith.constant 0.000000e+00 : f32
    %57 = vector.broadcast %cst_18 : f32 to vector<8x128xf32>
    %58 = arith.maximumf %49, %57 : vector<8x128xf32>
    %59 = arith.select %55, %56, %58 : vector<8x128xi1>, vector<8x128xf32>
    %cst_19 = arith.constant dense<0.000000e+00> : vector<8x128xf32>
    %60 = tpu.matmul %59, %26, %cst_19 {dimension_numbers = #tpu.dot_dimension_numbers<[1], [0], [0], [1], [0, 0, 1, 1], [], []>} : vector<8x128xf32>, vector<128x128xf32>, vector<8x128xf32> -> vector<8x128xf32>
    %61 = tpu.iota {dimensions = array<i32: 1>} : vector<8x128xi32>
    %c32_i32_20 = arith.constant 32 : i32
    %62 = vector.broadcast %c32_i32_20 : i32 to vector<8x128xi32>
    %63 = arith.cmpi sge, %61, %62 : vector<8x128xi32>
    %c64_i32_21 = arith.constant 64 : i32
    %64 = vector.broadcast %c64_i32_21 : i32 to vector<8x128xi32>
    %65 = arith.cmpi slt, %61, %64 : vector<8x128xi32>
    %66 = arith.andi %63, %65 : vector<8x128xi1>
    %67 = math.tanh %60 : vector<8x128xf32>
    %cst_22 = arith.constant 0.000000e+00 : f32
    %68 = vector.broadcast %cst_22 : f32 to vector<8x128xf32>
    %69 = arith.maximumf %60, %68 : vector<8x128xf32>
    %70 = arith.select %66, %67, %69 : vector<8x128xi1>, vector<8x128xf32>
    %cst_23 = arith.constant dense<0.000000e+00> : vector<8x128xf32>
    %71 = tpu.matmul %70, %26, %cst_23 {dimension_numbers = #tpu.dot_dimension_numbers<[1], [0], [0], [1], [0, 0, 1, 1], [], []>} : vector<8x128xf32>, vector<128x128xf32>, vector<8x128xf32> -> vector<8x128xf32>
    %72 = tpu.iota {dimensions = array<i32: 1>} : vector<8x128xi32>
    %c32_i32_24 = arith.constant 32 : i32
    %73 = vector.broadcast %c32_i32_24 : i32 to vector<8x128xi32>
    %74 = arith.cmpi sge, %72, %73 : vector<8x128xi32>
    %c64_i32_25 = arith.constant 64 : i32
    %75 = vector.broadcast %c64_i32_25 : i32 to vector<8x128xi32>
    %76 = arith.cmpi slt, %72, %75 : vector<8x128xi32>
    %77 = arith.andi %74, %76 : vector<8x128xi1>
    %78 = math.tanh %71 : vector<8x128xf32>
    %cst_26 = arith.constant 0.000000e+00 : f32
    %79 = vector.broadcast %cst_26 : f32 to vector<8x128xf32>
    %80 = arith.maximumf %71, %79 : vector<8x128xf32>
    %81 = arith.select %77, %78, %80 : vector<8x128xi1>, vector<8x128xf32>
    %cst_27 = arith.constant dense<0.000000e+00> : vector<8x128xf32>
    %82 = tpu.matmul %81, %26, %cst_27 {dimension_numbers = #tpu.dot_dimension_numbers<[1], [0], [0], [1], [0, 0, 1, 1], [], []>} : vector<8x128xf32>, vector<128x128xf32>, vector<8x128xf32> -> vector<8x128xf32>
    %83 = tpu.iota {dimensions = array<i32: 1>} : vector<8x128xi32>
    %c32_i32_28 = arith.constant 32 : i32
    %84 = vector.broadcast %c32_i32_28 : i32 to vector<8x128xi32>
    %85 = arith.cmpi sge, %83, %84 : vector<8x128xi32>
    %c64_i32_29 = arith.constant 64 : i32
    %86 = vector.broadcast %c64_i32_29 : i32 to vector<8x128xi32>
    %87 = arith.cmpi slt, %83, %86 : vector<8x128xi32>
    %88 = arith.andi %85, %87 : vector<8x128xi1>
    %89 = math.tanh %82 : vector<8x128xf32>
    %cst_30 = arith.constant 0.000000e+00 : f32
    %90 = vector.broadcast %cst_30 : f32 to vector<8x128xf32>
    %91 = arith.maximumf %82, %90 : vector<8x128xf32>
    %92 = arith.select %88, %89, %91 : vector<8x128xi1>, vector<8x128xf32>
    %cst_31 = arith.constant dense<0.000000e+00> : vector<8x128xf32>
    %93 = tpu.matmul %92, %26, %cst_31 {dimension_numbers = #tpu.dot_dimension_numbers<[1], [0], [0], [1], [0, 0, 1, 1], [], []>} : vector<8x128xf32>, vector<128x128xf32>, vector<8x128xf32> -> vector<8x128xf32>
    %94 = tpu.iota {dimensions = array<i32: 1>} : vector<8x128xi32>
    %c32_i32_32 = arith.constant 32 : i32
    %95 = vector.broadcast %c32_i32_32 : i32 to vector<8x128xi32>
    %96 = arith.cmpi sge, %94, %95 : vector<8x128xi32>
    %c64_i32_33 = arith.constant 64 : i32
    %97 = vector.broadcast %c64_i32_33 : i32 to vector<8x128xi32>
    %98 = arith.cmpi slt, %94, %97 : vector<8x128xi32>
    %99 = arith.andi %96, %98 : vector<8x128xi1>
    %100 = math.tanh %93 : vector<8x128xf32>
    %cst_34 = arith.constant 0.000000e+00 : f32
    %101 = vector.broadcast %cst_34 : f32 to vector<8x128xf32>
    %102 = arith.maximumf %93, %101 : vector<8x128xf32>
    %103 = arith.select %99, %100, %102 : vector<8x128xi1>, vector<8x128xf32>
    %cst_35 = arith.constant dense<0.000000e+00> : vector<8x128xf32>
    %104 = tpu.matmul %103, %26, %cst_35 {dimension_numbers = #tpu.dot_dimension_numbers<[1], [0], [0], [1], [0, 0, 1, 1], [], []>} : vector<8x128xf32>, vector<128x128xf32>, vector<8x128xf32> -> vector<8x128xf32>
    %105 = tpu.iota {dimensions = array<i32: 1>} : vector<8x128xi32>
    %c32_i32_36 = arith.constant 32 : i32
    %106 = vector.broadcast %c32_i32_36 : i32 to vector<8x128xi32>
    %107 = arith.cmpi sge, %105, %106 : vector<8x128xi32>
    %c64_i32_37 = arith.constant 64 : i32
    %108 = vector.broadcast %c64_i32_37 : i32 to vector<8x128xi32>
    %109 = arith.cmpi slt, %105, %108 : vector<8x128xi32>
    %110 = arith.andi %107, %109 : vector<8x128xi1>
    %111 = math.tanh %104 : vector<8x128xf32>
    %cst_38 = arith.constant 0.000000e+00 : f32
    %112 = vector.broadcast %cst_38 : f32 to vector<8x128xf32>
    %113 = arith.maximumf %104, %112 : vector<8x128xf32>
    %114 = arith.select %110, %111, %113 : vector<8x128xi1>, vector<8x128xf32>
    %c0_39 = arith.constant 0 : index
    %c0_40 = arith.constant 0 : index
    %115 = vector.load %arg5[%c0_39, %c0_40] : memref<128x128xf32, #tpu.memory_space<vmem>>, vector<128x128xf32>
    %cst_41 = arith.constant dense<0.000000e+00> : vector<8x128xf32>
    %116 = tpu.matmul %114, %115, %cst_41 {dimension_numbers = #tpu.dot_dimension_numbers<[1], [0], [0], [1], [0, 0, 1, 1], [], []>} : vector<8x128xf32>, vector<128x128xf32>, vector<8x128xf32> -> vector<8x128xf32>
    %c0_42 = arith.constant 0 : index
    %c0_43 = arith.constant 0 : index
    %117 = vector.load %arg6[%c0_42, %c0_43] : memref<8x128xf32, #tpu.memory_space<vmem>>, vector<8x128xf32>
    tpu.vector_store %arg6[%c0_42, %c0_43], %116 {strides = array<i32>} : memref<8x128xf32, #tpu.memory_space<vmem>>, vector<8x128xf32>,
    return
  }
  func.func @transform_0(%arg0: i32) -> (i32, i32) {
    %c0_i32 = arith.constant 0 : i32
    %c0_i32_0 = arith.constant 0 : i32
    return %arg0, %c0_i32 : i32, i32
  }
  func.func @transform_1(%arg0: i32) -> (i32, i32) {
    %c0_i32 = arith.constant 0 : i32
    %c0_i32_0 = arith.constant 0 : i32
    %c0_i32_1 = arith.constant 0 : i32
    return %c0_i32, %c0_i32_0 : i32, i32
  }
  func.func @transform_2(%arg0: i32) -> (i32, i32) {
    %c0_i32 = arith.constant 0 : i32
    %c0_i32_0 = arith.constant 0 : i32
    %c0_i32_1 = arith.constant 0 : i32
    return %c0_i32, %c0_i32_0 : i32, i32
  }
  func.func @transform_3(%arg0: i32) -> (i32, i32) {
    %c0_i32 = arith.constant 0 : i32
    %c0_i32_0 = arith.constant 0 : i32
    %c0_i32_1 = arith.constant 0 : i32
    return %c0_i32, %c0_i32_0 : i32, i32
  }
  func.func @transform_4(%arg0: i32) -> (i32, i32) {
    %c0_i32 = arith.constant 0 : i32
    %c0_i32_0 = arith.constant 0 : i32
    %c0_i32_1 = arith.constant 0 : i32
    return %c0_i32, %c0_i32_0 : i32, i32
  }
  func.func @transform_5(%arg0: i32) -> (i32, i32) {
    %c0_i32 = arith.constant 0 : i32
    %c0_i32_0 = arith.constant 0 : i32
    return %arg0, %c0_i32 : i32, i32
  }
}

</mosaic_0001>

<bundles_post_ra>
// kernel: tpu_custom_call.1
= control target key start
LH: loop header
LB: loop body
LE: loop exit
PB: predicated region body
PF: predicated region fallthrough
CT: control target
= control target key end

     0   :  { %10 = vsyncpa [#allocation3], 0  ;;  %s1854_s0 = inlined_call_operand.vmem [shape: f32[8,2], index: 0, kind: input, shape index: {}]   ;;  %s1855_s1 = inlined_call_operand.vmem [shape: f32[2,128], index: 1, kind: input, shape index: {}]   ;;  %s1856_s2 = inlined_call_operand.vmem [shape: f32[1,128], index: 2, kind: input, shape index: {}]   ;;  %s1857_s3 = inlined_call_operand.hbm [shape: f32[128,128], index: 3, kind: input, shape index: {}]   ;;  %s1858_s4 = inlined_call_operand.hbm [shape: f32[128,128], index: 4, kind: input, shape index: {}]   ;;  %s1859_s5 = inlined_call_operand.hbm [shape: f32[8,128], index: 5, kind: output, shape index: {}]  }
   0x1   :  { %11 = vsyncpa [#allocation6], 0 }
   0x2   :  { %12 = vsyncpa [#allocation4], 0  ;;  %s1577_s18 = smov [#allocation2]   ;;  %s1505_s22 = scalar_lea.hbm %s1857_s3, 2048 }
   0x3   :  { %s24_s19 = sshll.u32 %s1577_s18, 4  ;;  %p1506_p0 = scmp.ne.s32.totalorder %s1857_s3, %s1505_s22  ;;  %s25_s19 = int_to_ptr.vmem [resolvable:$true] %s24_s19 }
   0x4   :  { %p1509_p1 = scmp.lt.u32.totalorder %s1505_s22, %s1857_s3 }
   0x6   :  { %p1511_p2 = pnand %p1509_p1, %p1506_p0 }
   0x8   :  { %1514 = shalt.err (!%p1511_p2)
}
   0x9   :  { %s1515_s27 = scalar_lea.vmem %s25_s19, 2048  ;;  %p1520_p4 = scmp.lt.s32.totalorder %s25_s19, %s25_s19 }
   0xa   :  { %p1516_p3 = scmp.ne.s32.totalorder %s25_s19, %s1515_s27  ;;  %p1521_p5 = scmp.lt.s32.totalorder %s1515_s27, %s1515_s27 }
   0xc   :  { %p1522_p6 = por %p1521_p5, %p1520_p4 }
   0xe   :  { %p1523_p7 = pnand %p1522_p6, %p1516_p3 }
  0x10   :  { %1526 = shalt.err (!%p1523_p7)
}
  0x11   :  { %s1578_s28 = smov 128   ;;  %s1579_s29 = smov 8  }
  0x12   :  { %30 = dma.hbm_to_vmem [thread:$0]  %s1857_s3, 2048, %s25_s19, [#allocation3], %s1578_s28, %s1578_s28, %s1579_s29  }
  0x13   :  { %s1580_s7 = smov [#allocation5]   ;;  %s1527_s11 = scalar_lea.hbm %s1858_s4, 2048 }
  0x14   :  { %s36_s8 = sshll.u32 %s1580_s7, 4  ;;  %p1528_p8 = scmp.ne.s32.totalorder %s1858_s4, %s1527_s11  ;;  %s37_s8 = int_to_ptr.vmem [resolvable:$true] %s36_s8 }
  0x15   :  { %p1531_p9 = scmp.lt.u32.totalorder %s1527_s11, %s1858_s4 }
  0x17   :  { %p1533_p10 = pnand %p1531_p9, %p1528_p8 }
  0x19   :  { %1536 = shalt.err (!%p1533_p10)
}
  0x1a   :  { %s1537_s16 = scalar_lea.vmem %s37_s8, 2048  ;;  %p1542_p12 = scmp.lt.s32.totalorder %s37_s8, %s37_s8 }
  0x1b   :  { %p1538_p11 = scmp.ne.s32.totalorder %s37_s8, %s1537_s16  ;;  %p1543_p13 = scmp.lt.s32.totalorder %s1537_s16, %s1537_s16 }
  0x1d   :  { %p1544_p0 = por %p1543_p13, %p1542_p12 }
  0x1f   :  { %p1545_p1 = pnand %p1544_p0, %p1538_p11 }
  0x21   :  { %1548 = shalt.err (!%p1545_p1)
}
  0x22   :  { %42 = dma.hbm_to_vmem [thread:$0]  %s1858_s4, 2048, %s37_s8, [#allocation6], %s1578_s28, %s1578_s28, %s1579_s29  }
  0x23   :  { %1571 = dma.done.wait [#allocation3], 2048  }
  0x24   :  { %1572 = vsyncadd [#allocation3], 4294965248 }
  0x25   :  { %1573 = dma.done.wait [#allocation6], 2048  }
  0x26   :  { %1574 = vsyncadd [#allocation6], 4294965248  ;;  %v1581_v0 = vmov 0   ;;  %v1582_v1 = vmov 0.0|0.0   ;;  %v49_v2 = vld [vmem:[%s1854_s0] sm:$0xff]  ;;  %v88_v4 = vld [vmem:[#allocation2 + $0x8] sm:$0xff]  ;;  %v57_v29 = vlaneseq }
  0x27   :  { %1485 = vset.pattern.permute.xlu0 %v1581_v0  ;;  %1259 = vmatprep.subr.bf16.mxu0 %v1582_v1  ;;  %v87_v3 = vld [vmem:[#allocation2] sm:$0xff]  ;;  %v89_v6 = vld [vmem:[#allocation2 + $0x10] sm:$0xff]  ;;  %v90_v7 = vld [vmem:[#allocation2 + $0x18] sm:$0xff]  ;;  %v1583_v11 = vmov 1   ;;  %vm1584_vm0 = vmmov 0   ;;  %v1585_v18 = vmov 0.0  }
  0x28   :  { %1283 = vmatprep.subr.bf16.mxu1 %v1582_v1  ;;  %54 = vperm.xlu0 %1485, %v49_v2   ;;  %v1646_v5 = vpack.c.bf16 %v88_v4, %v87_v3  ;;  %v1649_v8 = vpack.c.bf16 %v90_v7, %v89_v6  ;;  %v91_v9 = vld [vmem:[#allocation2 + $0x20] sm:$0xff]  ;;  %v92_v10 = vld [vmem:[#allocation2 + $0x28] sm:$0xff]  ;;  %v93_v13 = vld [vmem:[#allocation2 + $0x30] sm:$0xff]  ;;  %v58_v30 = vshrl.u32 %v57_v29, 7  ;;  %v80_v43 = vand.u32 127, %v57_v29 }
  0x29   :  { %v1655_v12 = vpack.c.bf16 %v92_v10, %v91_v9  ;;  %v94_v14 = vld [vmem:[#allocation2 + $0x38] sm:$0xff]  ;;  %v95_v16 = vld [vmem:[#allocation2 + $0x40] sm:$0xff]  ;;  %v96_v17 = vld [vmem:[#allocation2 + $0x48] sm:$0xff]  ;;  %976 = vmatprep.mubr.msk.f32.mxu0 %vm1584_vm0, %v1585_v18  ;;  %1011 = vmatprep.mubr.msk.f32.mxu1 %vm1584_vm0, %v1585_v18 }
  0x2a   :  { %1261 = vmatpush3.bf16.msra.mxu0 %v1646_v5  ;;  %1285 = vmatpush3.bf16.msra.mxu1 %v1646_v5  ;;  %v1661_v15 = vpack.c.bf16 %v94_v14, %v93_v13  ;;  %v1671_v19 = vpack.c.bf16 %v96_v17, %v95_v16  ;;  %v97_v20 = vld [vmem:[#allocation2 + $0x50] sm:$0xff]  ;;  %v98_v21 = vld [vmem:[#allocation2 + $0x58] sm:$0xff]  ;;  %v99_v23 = vld [vmem:[#allocation2 + $0x60] sm:$0xff]  ;;  %v59_v31 = vsub.s32 0, %v58_v30  ;;  %v68_v32 = vsub.s32 1, %v58_v30 }
  0x2b   :  { %1262 = vmatprep.subr.bf16.mxu0 %v1582_v1  ;;  %1286 = vmatprep.subr.bf16.mxu1 %v1582_v1  ;;  %v1677_v22 = vpack.c.bf16 %v98_v21, %v97_v20  ;;  %v100_v24 = vld [vmem:[#allocation2 + $0x68] sm:$0xff]  ;;  %v101_v26 = vld [vmem:[#allocation2 + $0x70] sm:$0xff]  ;;  %v102_v27 = vld [vmem:[#allocation2 + $0x78] sm:$0xff]  ;;  %vm81_vm1 = vcmp.ge.s32.totalorder %v80_v43, 32  ;;  %vm82_vm2 = vcmp.lt.s32.totalorder %v80_v43, 64 }
  0x2c   :  { %1486 = vset.pattern.permute.xlu0 %v1583_v11  ;;  %v1683_v25 = vpack.c.bf16 %v100_v24, %v99_v23  ;;  %v1689_v28 = vpack.c.bf16 %v102_v27, %v101_v26  ;;  %v50_v33 = vld [vmem:[%s1855_s1] sm:$0x3]  ;;  %vm1704_vm3 = vmand %vm81_vm1, %vm82_vm2  ;;  %v688_v16 = vld [vmem:[#allocation5 + $0x8] sm:$0xff]  ;;  %s1586_s1 = smov [#allocation7]  }
  0x2d   :  { %63 = vperm.xlu0 %1486, %v49_v2   ;;  %v60_v35 = vrot.slane %v50_v33, %v59_v31  ;;  %v69_v36 = vrot.slane %v50_v33, %v68_v32  ;;  %v790_v40 = vld [vmem:[%s1856_s2] ss:$0 sm:$0xff]  ;;  %v689_v17 = vld [vmem:[#allocation5 + $0x10] sm:$0xff]  ;;  %v690_v20 = vld [vmem:[#allocation5 + $0x18] sm:$0xff]  ;;  %s780_s2 = sshll.u32 %s1586_s1, 4  ;;  %s781_s2 = int_to_ptr.vmem [resolvable:$true] %s780_s2 }
  0x2e   :  { %1264 = vmatpush3.bf16.msra.mxu0 %v1649_v8  ;;  %1288 = vmatpush3.bf16.msra.mxu1 %v1649_v8  ;;  %v1455_v21 = vpack.c.bf16 %v690_v20, %v689_v17  ;;  %v692_v23 = vld [vmem:[#allocation5 + $0x28] sm:$0xff]  ;;  %v694_v26 = vld [vmem:[#allocation5 + $0x38] sm:$0xff]  ;;  %s1549_s22 = scalar_lea.vmem %s781_s2, 128  ;;  %p1554_p3 = scmp.lt.s32.totalorder %s781_s2, %s781_s2 }
  0x2f   :  { %1265 = vmatprep.subr.bf16.mxu0 %v1582_v1  ;;  %1289 = vmatprep.subr.bf16.mxu1 %v1582_v1  ;;  %p1550_p2 = scmp.ne.s32.totalorder %s781_s2, %s1549_s22  ;;  %p1555_p4 = scmp.lt.s32.totalorder %s1549_s22, %s1549_s22 }
  0x31   :  { %p1556_p5 = por %p1555_p4, %p1554_p3 }
  0x32   :  { %1267 = vmatpush3.bf16.msra.mxu0 %v1655_v12  ;;  %1291 = vmatpush3.bf16.msra.mxu1 %v1655_v12 }
  0x33   :  { %1268 = vmatprep.subr.bf16.mxu0 %v1582_v1  ;;  %1292 = vmatprep.subr.bf16.mxu1 %v1582_v1  ;;  %p1557_p6 = pnand %p1556_p5, %p1550_p2 }
  0x36   :  { %1270 = vmatpush3.bf16.msra.mxu0 %v1661_v15  ;;  %1294 = vmatpush3.bf16.msra.mxu1 %v1661_v15 }
  0x37   :  { %1271 = vmatprep.subr.bf16.mxu0 %v1582_v1  ;;  %1295 = vmatprep.subr.bf16.mxu1 %v1582_v1 }
  0x3a   :  { %1273 = vmatpush3.bf16.msra.mxu0 %v1671_v19  ;;  %1297 = vmatpush3.bf16.msra.mxu1 %v1671_v19 }
  0x3b   :  { %1274 = vmatprep.subr.bf16.mxu0 %v1582_v1  ;;  %1298 = vmatprep.subr.bf16.mxu1 %v1582_v1 }
  0x3e   :  { %1276 = vmatpush3.bf16.msra.mxu0 %v1677_v22  ;;  %1300 = vmatpush3.bf16.msra.mxu1 %v1677_v22 }
  0x3f   :  { %1277 = vmatprep.subr.bf16.mxu0 %v1582_v1  ;;  %1301 = vmatprep.subr.bf16.mxu1 %v1582_v1 }
  0x42   :  { %1279 = vmatpush3.bf16.msra.mxu0 %v1683_v25  ;;  %1303 = vmatpush3.bf16.msra.mxu1 %v1683_v25 }
  0x43   :  { %1280 = vmatprep.subr.bf16.mxu0 %v1582_v1  ;;  %1304 = vmatprep.subr.bf16.mxu1 %v1582_v1 }
  0x46   :  { %1282 = vmatpush3.bf16.msra.mxu0 %v1689_v28  ;;  %1306 = vmatpush3.bf16.msra.mxu1 %v1689_v28 }
  0x47   :  { %1307 = vmatprep.subr.bf16.mxu0 %v1582_v1  ;;  %1331 = vmatprep.subr.bf16.mxu1 %v1582_v1 }
  0xa7   :  { %v55_v34 = vpop.permute.xlu0 %54 }
  0xa8   :  { %v61_v38 = vmul.f32 %v60_v35, %v55_v34  ;;  %v697_v35 = vld [vmem:[#allocation5 + $0x50] sm:$0xff] }
  0xac   :  { %v64_v37 = vpop.permute.xlu0 %63 }
  0xad   :  { %v70_v39 = vmul.f32 %v69_v36, %v64_v37  ;;  %v698_v36 = vld [vmem:[#allocation5 + $0x58] sm:$0xff] }
  0xae   :  { %v1467_v37 = vpack.c.bf16 %v698_v36, %v697_v35 }
  0xaf   :  { %v71_v41 = vadd.f32 %v70_v39, %v61_v38  ;;  %v699_v38 = vld [vmem:[#allocation5 + $0x60] sm:$0xff]  ;;  %v700_v39 = vld [vmem:[#allocation5 + $0x68] sm:$0xff] }
  0xb1   :  { %v78_v42 = vadd.f32 %v790_v40, %v71_v41  ;;  %v1470_v40 = vpack.c.bf16 %v700_v39, %v699_v38  ;;  %v701_v41 = vld [vmem:[#allocation5 + $0x70] sm:$0xff] }
  0xb3   :  { %1487 = vtanh.f32 %v78_v42  ;;  %v85_v45 = vmax.f32 %v78_v42, 0.0  ;;  %v702_v42 = vld [vmem:[#allocation5 + $0x78] sm:$0xff] }
  0xb4   :  { %v1473_v43 = vpack.c.bf16 %v702_v42, %v701_v41 }
  0xbd   :  { %v1488_v46 = vpop.eup %1487 }
  0xbe   :  { %v86_v47 = vsel %vm1704_vm3, %v1488_v46, %v85_v45 }
  0xbf   :  { %977 = vmatmul.mubr.f32.vlgmr.msra.gmra.mrb[0].mxu0 %v86_v47 }
  0xc0   :  { %1309 = vmatpush3.bf16.msra.mxu0 %v1646_v5  ;;  %1046 = vmatprep.mubr.msk.f32.mxu0 %vm1584_vm0, %v1585_v18 }
  0xc1   :  { %1310 = vmatprep.subr.bf16.mxu0 %v1582_v1 }
  0xc4   :  { %1312 = vmatpush3.bf16.msra.mxu0 %v1649_v8 }
  0xc5   :  { %1313 = vmatprep.subr.bf16.mxu0 %v1582_v1 }
  0xc8   :  { %1315 = vmatpush3.bf16.msra.mxu0 %v1655_v12 }
  0xc9   :  { %1316 = vmatprep.subr.bf16.mxu0 %v1582_v1 }
  0xcc   :  { %1318 = vmatpush3.bf16.msra.mxu0 %v1661_v15 }
  0xcd   :  { %1319 = vmatprep.subr.bf16.mxu0 %v1582_v1 }
  0xd0   :  { %1321 = vmatpush3.bf16.msra.mxu0 %v1671_v19 }
  0xd1   :  { %1322 = vmatprep.subr.bf16.mxu0 %v1582_v1 }
  0xd4   :  { %1324 = vmatpush3.bf16.msra.mxu0 %v1677_v22 }
  0xd5   :  { %1325 = vmatprep.subr.bf16.mxu0 %v1582_v1 }
  0xd8   :  { %1327 = vmatpush3.bf16.msra.mxu0 %v1683_v25 }
  0xd9   :  { %1328 = vmatprep.subr.bf16.mxu0 %v1582_v1 }
  0xdc   :  { %1330 = vmatpush3.bf16.msra.mxu0 %v1689_v28 }
  0xdd   :  { %1355 = vmatprep.subr.bf16.mxu0 %v1582_v1 }
 0x192   :  { %v169_v48 = vpop.f32.mrb[0].mxu0 }
 0x193   :  { %1489 = vtanh.f32 %v169_v48  ;;  %v978_v49 = vpop.f32.mrb[1].mxu0  ;;  %v174_v50 = vmax.f32 %v169_v48, 0.0 }
 0x19d   :  { %v1490_v51 = vpop.eup %1489 }
 0x19e   :  { %v175_v52 = vsel %vm1704_vm3, %v1490_v51, %v174_v50 }
 0x19f   :  { %1012 = vmatmul.mubr.f32.vlgmr.msra.gmra.mrb[0].mxu1 %v175_v52 }
 0x1a0   :  { %1333 = vmatpush3.bf16.msra.mxu1 %v1646_v5  ;;  %1081 = vmatprep.mubr.msk.f32.mxu1 %vm1584_vm0, %v1585_v18 }
 0x1a1   :  { %1334 = vmatprep.subr.bf16.mxu1 %v1582_v1 }
 0x1a4   :  { %1336 = vmatpush3.bf16.msra.mxu1 %v1649_v8 }
 0x1a5   :  { %1337 = vmatprep.subr.bf16.mxu1 %v1582_v1 }
 0x1a8   :  { %1339 = vmatpush3.bf16.msra.mxu1 %v1655_v12 }
 0x1a9   :  { %1340 = vmatprep.subr.bf16.mxu1 %v1582_v1 }
 0x1ac   :  { %1342 = vmatpush3.bf16.msra.mxu1 %v1661_v15 }
 0x1ad   :  { %1343 = vmatprep.subr.bf16.mxu1 %v1582_v1 }
 0x1b0   :  { %1345 = vmatpush3.bf16.msra.mxu1 %v1671_v19 }
 0x1b1   :  { %1346 = vmatprep.subr.bf16.mxu1 %v1582_v1 }
 0x1b4   :  { %1348 = vmatpush3.bf16.msra.mxu1 %v1677_v22 }
 0x1b5   :  { %1349 = vmatprep.subr.bf16.mxu1 %v1582_v1 }
 0x1b8   :  { %1351 = vmatpush3.bf16.msra.mxu1 %v1683_v25 }
 0x1b9   :  { %1352 = vmatprep.subr.bf16.mxu1 %v1582_v1 }
 0x1bc   :  { %1354 = vmatpush3.bf16.msra.mxu1 %v1689_v28 }
 0x1bd   :  { %1379 = vmatprep.subr.bf16.mxu1 %v1582_v1 }
 0x272   :  { %v242_v53 = vpop.f32.mrb[0].mxu1 }
 0x273   :  { %1491 = vtanh.f32 %v242_v53  ;;  %v1013_v54 = vpop.f32.mrb[1].mxu1  ;;  %v247_v55 = vmax.f32 %v242_v53, 0.0 }
 0x27d   :  { %v1492_v56 = vpop.eup %1491 }
 0x27e   :  { %v248_v57 = vsel %vm1704_vm3, %v1492_v56, %v247_v55 }
 0x27f   :  { %1047 = vmatmul.mubr.f32.vlgmr.msra.gmra.mrb[2].mxu0 %v248_v57 }
 0x280   :  { %1357 = vmatpush3.bf16.msra.mxu0 %v1646_v5  ;;  %1116 = vmatprep.mubr.msk.f32.mxu0 %vm1584_vm0, %v1585_v18 }
 0x281   :  { %1358 = vmatprep.subr.bf16.mxu0 %v1582_v1 }
 0x284   :  { %1360 = vmatpush3.bf16.msra.mxu0 %v1649_v8 }
 0x285   :  { %1361 = vmatprep.subr.bf16.mxu0 %v1582_v1 }
 0x288   :  { %1363 = vmatpush3.bf16.msra.mxu0 %v1655_v12 }
 0x289   :  { %1364 = vmatprep.subr.bf16.mxu0 %v1582_v1 }
 0x28c   :  { %1366 = vmatpush3.bf16.msra.mxu0 %v1661_v15 }
 0x28d   :  { %1367 = vmatprep.subr.bf16.mxu0 %v1582_v1 }
 0x290   :  { %1369 = vmatpush3.bf16.msra.mxu0 %v1671_v19 }
 0x291   :  { %1370 = vmatprep.subr.bf16.mxu0 %v1582_v1 }
 0x294   :  { %1372 = vmatpush3.bf16.msra.mxu0 %v1677_v22 }
 0x295   :  { %1373 = vmatprep.subr.bf16.mxu0 %v1582_v1 }
 0x298   :  { %1375 = vmatpush3.bf16.msra.mxu0 %v1683_v25 }
 0x299   :  { %1376 = vmatprep.subr.bf16.mxu0 %v1582_v1 }
 0x29c   :  { %1378 = vmatpush3.bf16.msra.mxu0 %v1689_v28 }
 0x29d   :  { %1403 = vmatprep.subr.bf16.mxu0 %v1582_v1 }
 0x352   :  { %v315_v58 = vpop.f32.mrb[2].mxu0 }
 0x353   :  { %1493 = vtanh.f32 %v315_v58  ;;  %v1048_v59 = vpop.f32.mrb[3].mxu0  ;;  %v320_v60 = vmax.f32 %v315_v58, 0.0 }
 0x35d   :  { %v1494_v61 = vpop.eup %1493 }
 0x35e   :  { %v321_v62 = vsel %vm1704_vm3, %v1494_v61, %v320_v60 }
 0x35f   :  { %1082 = vmatmul.mubr.f32.vlgmr.msra.gmra.mrb[2].mxu1 %v321_v62 }
 0x360   :  { %1381 = vmatpush3.bf16.msra.mxu1 %v1646_v5  ;;  %1151 = vmatprep.mubr.msk.f32.mxu1 %vm1584_vm0, %v1585_v18 }
 0x361   :  { %1382 = vmatprep.subr.bf16.mxu1 %v1582_v1 }
 0x364   :  { %1384 = vmatpush3.bf16.msra.mxu1 %v1649_v8 }
 0x365   :  { %1385 = vmatprep.subr.bf16.mxu1 %v1582_v1 }
 0x368   :  { %1387 = vmatpush3.bf16.msra.mxu1 %v1655_v12 }
 0x369   :  { %1388 = vmatprep.subr.bf16.mxu1 %v1582_v1 }
 0x36c   :  { %1390 = vmatpush3.bf16.msra.mxu1 %v1661_v15 }
 0x36d   :  { %1391 = vmatprep.subr.bf16.mxu1 %v1582_v1 }
 0x370   :  { %1393 = vmatpush3.bf16.msra.mxu1 %v1671_v19 }
 0x371   :  { %1394 = vmatprep.subr.bf16.mxu1 %v1582_v1 }
 0x374   :  { %1396 = vmatpush3.bf16.msra.mxu1 %v1677_v22 }
 0x375   :  { %1397 = vmatprep.subr.bf16.mxu1 %v1582_v1 }
 0x378   :  { %1399 = vmatpush3.bf16.msra.mxu1 %v1683_v25 }
 0x379   :  { %1400 = vmatprep.subr.bf16.mxu1 %v1582_v1 }
 0x37c   :  { %1402 = vmatpush3.bf16.msra.mxu1 %v1689_v28 }
 0x37d   :  { %1427 = vmatprep.subr.bf16.mxu1 %v1582_v1 }
 0x432   :  { %v388_v63 = vpop.f32.mrb[2].mxu1 }
 0x433   :  { %1495 = vtanh.f32 %v388_v63  ;;  %v1083_v0 = vpop.f32.mrb[3].mxu1  ;;  %v393_v2 = vmax.f32 %v388_v63, 0.0 }
 0x43d   :  { %v1496_v3 = vpop.eup %1495 }
 0x43e   :  { %v394_v4 = vsel %vm1704_vm3, %v1496_v3, %v393_v2 }
 0x43f   :  { %1117 = vmatmul.mubr.f32.vlgmr.msra.gmra.mrb[4].mxu0 %v394_v4 }
 0x440   :  { %1405 = vmatpush3.bf16.msra.mxu0 %v1646_v5  ;;  %1186 = vmatprep.mubr.msk.f32.mxu0 %vm1584_vm0, %v1585_v18 }
 0x441   :  { %1406 = vmatprep.subr.bf16.mxu0 %v1582_v1 }
 0x444   :  { %1408 = vmatpush3.bf16.msra.mxu0 %v1649_v8 }
 0x445   :  { %1409 = vmatprep.subr.bf16.mxu0 %v1582_v1 }
 0x448   :  { %1411 = vmatpush3.bf16.msra.mxu0 %v1655_v12 }
 0x449   :  { %1412 = vmatprep.subr.bf16.mxu0 %v1582_v1 }
 0x44c   :  { %1414 = vmatpush3.bf16.msra.mxu0 %v1661_v15 }
 0x44d   :  { %1415 = vmatprep.subr.bf16.mxu0 %v1582_v1 }
 0x450   :  { %1417 = vmatpush3.bf16.msra.mxu0 %v1671_v19 }
 0x451   :  { %1418 = vmatprep.subr.bf16.mxu0 %v1582_v1 }
 0x454   :  { %1420 = vmatpush3.bf16.msra.mxu0 %v1677_v22 }
 0x455   :  { %1421 = vmatprep.subr.bf16.mxu0 %v1582_v1 }
 0x458   :  { %1423 = vmatpush3.bf16.msra.mxu0 %v1683_v25 }
 0x459   :  { %1424 = vmatprep.subr.bf16.mxu0 %v1582_v1 }
 0x45c   :  { %1426 = vmatpush3.bf16.msra.mxu0 %v1689_v28 }
 0x45d   :  { %1451 = vmatprep.subr.bf16.mxu0 %v1582_v1 }
 0x512   :  { %v461_v6 = vpop.f32.mrb[4].mxu0 }
 0x513   :  { %1497 = vtanh.f32 %v461_v6  ;;  %v1118_v7 = vpop.f32.mrb[5].mxu0  ;;  %v466_v9 = vmax.f32 %v461_v6, 0.0 }
 0x51d   :  { %v1498_v10 = vpop.eup %1497 }
 0x51e   :  { %v467_v11 = vsel %vm1704_vm3, %v1498_v10, %v466_v9 }
 0x51f   :  { %1152 = vmatmul.mubr.f32.vlgmr.msra.gmra.mrb[4].mxu1 %v467_v11 }
 0x520   :  { %1429 = vmatpush3.bf16.msra.mxu1 %v1646_v5  ;;  %1221 = vmatprep.mubr.msk.f32.mxu1 %vm1584_vm0, %v1585_v18 }
 0x521   :  { %1430 = vmatprep.subr.bf16.mxu1 %v1582_v1 }
 0x524   :  { %1432 = vmatpush3.bf16.msra.mxu1 %v1649_v8 }
 0x525   :  { %1433 = vmatprep.subr.bf16.mxu1 %v1582_v1 }
 0x528   :  { %1435 = vmatpush3.bf16.msra.mxu1 %v1655_v12 }
 0x529   :  { %1436 = vmatprep.subr.bf16.mxu1 %v1582_v1 }
 0x52c   :  { %1438 = vmatpush3.bf16.msra.mxu1 %v1661_v15  ;;  %v687_v15 = vld [vmem:[#allocation5] sm:$0xff] }
 0x52d   :  { %1439 = vmatprep.subr.bf16.mxu1 %v1582_v1 }
 0x530   :  { %1441 = vmatpush3.bf16.msra.mxu1 %v1671_v19  ;;  %v1452_v19 = vpack.c.bf16 %v688_v16, %v687_v15 }
 0x531   :  { %1442 = vmatprep.subr.bf16.mxu1 %v1582_v1 }
 0x534   :  { %1444 = vmatpush3.bf16.msra.mxu1 %v1677_v22  ;;  %v691_v22 = vld [vmem:[#allocation5 + $0x20] sm:$0xff] }
 0x535   :  { %1445 = vmatprep.subr.bf16.mxu1 %v1582_v1  ;;  %v1458_v24 = vpack.c.bf16 %v692_v23, %v691_v22 }
 0x538   :  { %1447 = vmatpush3.bf16.msra.mxu1 %v1683_v25  ;;  %v693_v25 = vld [vmem:[#allocation5 + $0x30] sm:$0xff] }
 0x539   :  { %1448 = vmatprep.subr.bf16.mxu1 %v1582_v1  ;;  %v1461_v27 = vpack.c.bf16 %v694_v26, %v693_v25 }
 0x53c   :  { %1450 = vmatpush3.bf16.msra.mxu1 %v1689_v28  ;;  %v696_v28 = vld [vmem:[#allocation5 + $0x48] sm:$0xff] }
 0x5f2   :  { %v534_v5 = vpop.f32.mrb[4].mxu1 }
 0x5f3   :  { %1499 = vtanh.f32 %v534_v5  ;;  %v1153_v8 = vpop.f32.mrb[5].mxu1  ;;  %v539_v12 = vmax.f32 %v534_v5, 0.0 }
 0x5fd   :  { %v1500_v13 = vpop.eup %1499 }
 0x5fe   :  { %v540_v14 = vsel %vm1704_vm3, %v1500_v13, %v539_v12 }
 0x5ff   :  { %1187 = vmatmul.mubr.f32.vlgmr.msra.gmra.mrb[6].mxu0 %v540_v14 }
 0x600   :  { %1256 = vmatprep.mubr.msk.f32.mxu0 %vm1584_vm0, %v1585_v18  ;;  %1453 = vmatpush3.bf16.msra.mxu0 %v1452_v19  ;;  %v695_v18 = vld [vmem:[#allocation5 + $0x40] sm:$0xff] }
 0x601   :  { %1454 = vmatprep.subr.bf16.mxu0 %v1582_v1  ;;  %v1464_v29 = vpack.c.bf16 %v696_v28, %v695_v18 }
 0x604   :  { %1456 = vmatpush3.bf16.msra.mxu0 %v1455_v21 }
 0x605   :  { %1457 = vmatprep.subr.bf16.mxu0 %v1582_v1 }
 0x608   :  { %1459 = vmatpush3.bf16.msra.mxu0 %v1458_v24 }
 0x609   :  { %1460 = vmatprep.subr.bf16.mxu0 %v1582_v1 }
 0x60c   :  { %1462 = vmatpush3.bf16.msra.mxu0 %v1461_v27 }
 0x60d   :  { %1463 = vmatprep.subr.bf16.mxu0 %v1582_v1 }
 0x610   :  { %1465 = vmatpush3.bf16.msra.mxu0 %v1464_v29 }
 0x611   :  { %1466 = vmatprep.subr.bf16.mxu0 %v1582_v1 }
 0x614   :  { %1468 = vmatpush3.bf16.msra.mxu0 %v1467_v37 }
 0x615   :  { %1469 = vmatprep.subr.bf16.mxu0 %v1582_v1 }
 0x618   :  { %1471 = vmatpush3.bf16.msra.mxu0 %v1470_v40 }
 0x619   :  { %1472 = vmatprep.subr.bf16.mxu0 %v1582_v1 }
 0x61c   :  { %1474 = vmatpush3.bf16.msra.mxu0 %v1473_v43 }
 0x6d2   :  { %v607_v30 = vpop.f32.mrb[6].mxu0 }
 0x6d3   :  { %1501 = vtanh.f32 %v607_v30  ;;  %v1188_v31 = vpop.f32.mrb[7].mxu0  ;;  %v612_v32 = vmax.f32 %v607_v30, 0.0 }
 0x6dd   :  { %v1502_v33 = vpop.eup %1501 }
 0x6de   :  { %v613_v34 = vsel %vm1704_vm3, %v1502_v33, %v612_v32 }
 0x6df   :  { %1222 = vmatmul.mubr.f32.vlgmr.msra.gmra.mrb[6].mxu1 %v613_v34 }
 0x7b2   :  { %v680_v45 = vpop.f32.mrb[6].mxu1 }
 0x7b3   :  { %1503 = vtanh.f32 %v680_v45  ;;  %v1223_v46 = vpop.f32.mrb[7].mxu1  ;;  %v685_v47 = vmax.f32 %v680_v45, 0.0 }
 0x7bd   :  { %v1504_v48 = vpop.eup %1503 }
 0x7be   :  { %v686_v49 = vsel %vm1704_vm3, %v1504_v48, %v685_v47 }
 0x7bf   :  { %1257 = vmatmul.mubr.f32.vlgmr.msra.gmra.mrb[8].mxu0 %v686_v49 }
 0x892   :  { %v769_v50 = vpop.f32.mrb[8].mxu0 }
 0x893   :  { %773 = vst [vmem:[#allocation7] sm:$0xff] %v769_v50  ;;  %v1258_v51 = vpop.f32.mrb[9].mxu0 }
 0x894   :  { %1560 = shalt.err (!%p1557_p6)
}
 0x895   :  { %s1561_s25 = scalar_lea.hbm %s1859_s5, 128 }
 0x896   :  { %p1562_p7 = scmp.ne.s32.totalorder %s1859_s5, %s1561_s25  ;;  %p1565_p8 = scmp.lt.u32.totalorder %s1561_s25, %s1859_s5 }
 0x898   :  { %p1567_p9 = pnand %p1565_p8, %p1562_p7 }
 0x89a   :  { %1570 = shalt.err (!%p1567_p9)
}
 0x89b   :  { %783 = dma.vmem_to_hbm [thread:$0]  %s781_s2, 128, %s1859_s5, [#allocation4]  }
 0x89c   :  { %1575 = dma.done.wait [#allocation4], 128  }
 0x89d   :  { %1576 = vsyncadd [#allocation4], 4294967168 }
 0x89e   :  { %787 = vsyncpa [#allocation3], 1 }
 0x89f   :  { %788 = vsyncpa [#allocation6], 1 }
 0x8a0   :  { %789 = vsyncpa [#allocation4], 1 }

</bundles_post_ra>
